<compile_context>
chip_gen: v7x
topology: tpu7x:2x2x1
jax: 0.10.0
libtpu: 0.0.40
codegen_flags: <defaults>
</compile_context>

<pallas_src>
import jax
import jax.numpy as jnp
from jax.experimental import pallas as pl
from jax.experimental.pallas import tpu as pltpu


# ----------------------------- Pallas kernel --------------------------------
def _edge_mlp_kernel(idx_ref, nodeT_ref, w1sT_ref, w1dT_ref, b1_ref, w2_ref, b2_ref,
                     out_ref):
    n_nodes = nodeT_ref.shape[1]
    te = idx_ref.shape[1]
    cdt = nodeT_ref.dtype

    # ---- fused gather: one-hot MXU matmuls against the VMEM-resident node table ----
    # Each gathered column is exactly one bf16 node value accumulated in f32 -> exact.
    node_ids = jax.lax.broadcasted_iota(jnp.int32, (n_nodes, te), 0)       # [N, TE]
    onehot_src = (node_ids == idx_ref[0:1, :]).astype(cdt)                 # [N, TE]
    onehot_dst = (node_ids == idx_ref[1:2, :]).astype(cdt)                 # [N, TE]
    embT_src = jnp.dot(nodeT_ref[...], onehot_src,
                       preferred_element_type=jnp.float32).astype(cdt)     # [H, TE]
    embT_dst = jnp.dot(nodeT_ref[...], onehot_dst,
                       preferred_element_type=jnp.float32).astype(cdt)     # [H, TE]

    # ---- layer 1 (transposed):  (concat([src, dst], 1) @ W1)^T,  f32 accumulation ----
    h = (jnp.dot(w1sT_ref[...], embT_src, preferred_element_type=jnp.float32)
         + jnp.dot(w1dT_ref[...], embT_dst, preferred_element_type=jnp.float32)
         + b1_ref[...])                                                    # [D, TE] + [D, 1]
    h = jnp.maximum(h, 0.0)                                                # ReLU (f32, VPU)

    # ---- layer 2 (D -> 1) as an M=1 transposed matmul -> lane-dense [1, TE] block ----
    logits = jnp.dot(w2_ref[...], h, preferred_element_type=jnp.float32) + b2_ref[0]
    out_ref[...] = logits.astype(out_ref.dtype)                            # [1, TE]


def _round_up(x, m):
    return ((x + m - 1) // m) * m


def edge_mlp_pallas(node_emb_T, edge_index, w1, b1, w2, b2, *, tile_e=8192):
    """mlp_edge_model(concat([node_emb[src], node_emb[dst]], 1)) with the gather fused.

    node_emb_T : [H, N]  transposed node embeddings (bf16 preferred), VMEM-resident
    edge_index : [2, E]  int32 (row 0 = src, row 1 = dst)
    w1 : [2H, D], b1 : [D], w2 : [D, 1], b2 : [1]   (f32 parameters)
    returns [E, 1] float32
    """
    H, N = node_emb_T.shape
    D = w1.shape[1]
    E = edge_index.shape[1]
    cdt = node_emb_T.dtype                      # compute dtype for MXU inputs (bf16 preferred)

    # Keep >= 4 grid steps when E allows: 2 TensorCores on v7x x 2 steps each so the
    # BlockSpec pipeline still has something to prefetch/writeback against per core.
    tile_e = min(tile_e, max(128, _round_up(pl.cdiv(E, 4), 128)))
    grid = (pl.cdiv(E, tile_e),)                # ragged tail block is masked — no jnp.pad

    w1sT = w1[:H, :].T.astype(cdt)              # [D, H]  acts on emb_src
    w1dT = w1[H:, :].T.astype(cdt)              # [D, H]  acts on emb_dst
    b1_col = b1.reshape(D, 1).astype(jnp.float32)
    w2_row = w2.reshape(1, D).astype(jnp.float32)
    b2_1d = b2.reshape(1).astype(jnp.float32)

    n_itemsize = jnp.dtype(cdt).itemsize
    cost = pl.CostEstimate(
        flops=E * (4 * N * H + 4 * H * D + 2 * D),
        transcendentals=0,
        bytes_accessed=(2 * E * 4                      # int32 index stream
                        + E * 4                        # f32 logits out
                        + H * N * n_itemsize           # node table (resident)
                        + 2 * D * H * n_itemsize       # W1 halves (transposed)
                        + (2 * D + 1) * 4))            # b1, w2, b2

    out = pl.pallas_call(
        _edge_mlp_kernel,
        out_shape=jax.ShapeDtypeStruct((1, E), jnp.float32),   # lane-dense output
        grid=grid,
        in_specs=[
            pl.BlockSpec((2, tile_e), lambda i: (0, i)),       # src/dst index tile (int32)
            pl.BlockSpec((H, N), lambda i: (0, 0)),            # node table (resident)
            pl.BlockSpec((D, H), lambda i: (0, 0)),            # W1^T (src half)
            pl.BlockSpec((D, H), lambda i: (0, 0)),            # W1^T (dst half)
            pl.BlockSpec((D, 1), lambda i: (0, 0)),            # b1 as a column (f32)
            pl.BlockSpec((1, D), lambda i: (0, 0)),            # W2 as a row (f32)
            pl.BlockSpec(memory_space=pltpu.MemorySpace.SMEM),  # b2 scalar in SMEM
        ],
        out_specs=pl.BlockSpec((1, tile_e), lambda i: (0, i)),
        compiler_params=pltpu.CompilerParams(
            dimension_semantics=("parallel",),
            # tiny per-tile footprint (index tiles + [D, TE] f32 intermediates + node table);
            # 48 MiB leaves headroom and stays safe under v7x's 64 MiB physical VMEM.
            vmem_limit_bytes=48 * 1024 * 1024),
        cost_estimate=cost,
    )(edge_index, node_emb_T, w1sT, w1dT, b1_col, w2_row, b2_1d)

    return out.reshape(E, 1)


# --------------------------- parameter init ----------------------------------
def xavier_uniform(key, fan_in, fan_out, dtype=jnp.float32):
    bound = (6.0 / (fan_in + fan_out)) ** 0.5
    return jax.random.uniform(key, (fan_in, fan_out), dtype=dtype,
                              minval=-bound, maxval=bound)


def init_view_learner_params(key, hidden_c, mlp_edge_model_dim=64):
    k1, k2 = jax.random.split(key)
    w1 = xavier_uniform(k1, 2 * hidden_c, mlp_edge_model_dim)   # Linear(2H, D)
    b1 = jnp.zeros((mlp_edge_model_dim,), jnp.float32)          # bias.fill_(0)
    w2 = xavier_uniform(k2, mlp_edge_model_dim, 1)              # Linear(D, 1)
    b2 = jnp.zeros((1,), jnp.float32)
    return w1, b1, w2, b2


# ------------------------------ ViewLearner -----------------------------------
def view_learner_forward(node_features, edge_index, enc_w, mlp_params,
                         compute_dtype=jnp.bfloat16):
    """Full ViewLearner.forward.

    node_features : [N, F]   graph node features
    edge_index    : [2, E]   int32 (src row 0, dst row 1)
    enc_w         : [F, H]   placeholder encoder weight
    mlp_params    : (w1, b1, w2, b2)
    """
    # TODO(synk): `self.encoder` is an injected external GNN; stand in with a
    # deterministic linear encoder (plain JAX glue).
    node_emb = node_features @ enc_w                      # [N, H] f32

    # Transposed bf16 node table: stays resident in VMEM inside the kernel; only the
    # int32 edge indices are streamed per tile (gather fused into the kernel).
    node_emb_T = node_emb.astype(compute_dtype).T         # [H, N]

    w1, b1, w2, b2 = mlp_params
    return edge_mlp_pallas(node_emb_T, edge_index, w1, b1, w2, b2)  # [E, 1] f32


# --------------------------------- main ---------------------------------------
if __name__ == "__main__":
    key = jax.random.PRNGKey(0)
    k_feat, k_edge, k_enc, k_mlp = jax.random.split(key, 4)

    # Small shapes consistent with the module; E deliberately NOT tile-aligned
    # to exercise the ragged (masked) trailing block path.
    N, F, H, D, E = 16, 8, 32, 64, 300

    node_features = jax.random.normal(k_feat, (N, F), jnp.float32)
    edge_index = jax.random.randint(k_edge, (2, E), 0, N, dtype=jnp.int32)
    enc_w = xavier_uniform(k_enc, F, H)
    mlp_params = init_view_learner_params(k_mlp, hidden_c=H, mlp_edge_model_dim=D)

    fwd = jax.jit(view_learner_forward)
    edge_logits = jax.block_until_ready(fwd(node_features, edge_index, enc_w, mlp_params))

    # ---- reference checks (pure JAX) ----
    w1, b1, w2, b2 = mlp_params
    node_emb = node_features @ enc_w
    src, dst = edge_index[0], edge_index[1]

    # full-f32 reference (module semantics)
    edge_emb = jnp.concatenate([node_emb[src], node_emb[dst]], axis=1)
    ref_f32 = jnp.maximum(edge_emb @ w1 + b1, 0.0) @ w2 + b2

    # precision-matched reference (bf16 node table / W1, f32 accumulation — same as kernel)
    ne_bf = node_emb.astype(jnp.bfloat16)
    h_ref = jnp.maximum(
        jnp.dot(ne_bf[src], w1[:H, :].astype(jnp.bfloat16),
                preferred_element_type=jnp.float32)
        + jnp.dot(ne_bf[dst], w1[H:, :].astype(jnp.bfloat16),
                  preferred_element_type=jnp.float32)
        + b1, 0.0)
    ref_bf = h_ref @ w2 + b2

    assert edge_logits.shape == (E, 1)
    assert jnp.allclose(edge_logits, ref_bf, atol=2e-3, rtol=2e-3)
    assert jnp.allclose(edge_logits, ref_f32, atol=5e-2, rtol=5e-2)
    print("KERNEL_OK")
</pallas_src>

<mosaic_0001>
module attributes {stable_mosaic.version = 11 : i64} {
  func.func @_edge_mlp_kernel(%arg0: i32, %arg1: memref<2x128xi32, #tpu.memory_space<vmem>>, %arg2: memref<32x16xbf16, #tpu.memory_space<vmem>>, %arg3: memref<64x32xbf16, #tpu.memory_space<vmem>>, %arg4: memref<64x32xbf16, #tpu.memory_space<vmem>>, %arg5: memref<64x1xf32, #tpu.memory_space<vmem>>, %arg6: memref<1x64xf32, #tpu.memory_space<vmem>>, %arg7: memref<1xf32, #tpu.memory_space<smem>>, %arg8: memref<1x128xf32, #tpu.memory_space<vmem>>) attributes {dimension_semantics = [#tpu.dimension_semantics<parallel>], iteration_bounds = array<i64: 3>, scalar_prefetch = 0 : i64, scratch_operands = 0 : i64, tpu.core_type = #tpu.core_type<tc>, window_params = [{transform_indices = @transform_0, window_bounds = array<i64: 2, 128>}, {pipeline_mode = #tpu.pipeline_mode<synchronous>, transform_indices = @transform_1, window_bounds = array<i64: 32, 16>}, {pipeline_mode = #tpu.pipeline_mode<synchronous>, transform_indices = @transform_2, window_bounds = array<i64: 64, 32>}, {pipeline_mode = #tpu.pipeline_mode<synchronous>, transform_indices = @transform_3, window_bounds = array<i64: 64, 32>}, {pipeline_mode = #tpu.pipeline_mode<synchronous>, transform_indices = @transform_4, window_bounds = array<i64: 64, 1>}, {pipeline_mode = #tpu.pipeline_mode<synchronous>, transform_indices = @transform_5, window_bounds = array<i64: 1, 64>}, {transform_indices = @transform_6, window_bounds = array<i64: 1>}, {transform_indices = @transform_7, window_bounds = array<i64: 1, 128>}]} {
    %0 = tpu.iota {dimensions = array<i32: 0>} : vector<16x128xi32>
    %c0 = arith.constant 0 : index
    %c0_0 = arith.constant 0 : index
    %1 = vector.load %arg1[%c0, %c0_0] : memref<2x128xi32, #tpu.memory_space<vmem>>, vector<1x128xi32>
    %2 = vector.broadcast %1 : vector<1x128xi32> to vector<16x128xi32>
    %3 = arith.cmpi eq, %0, %2 : vector<16x128xi32>
    %4 = arith.extui %3 : vector<16x128xi1> to vector<16x128xi32>
    %5 = arith.sitofp %4 : vector<16x128xi32> to vector<16x128xf32>
    %6 = arith.truncf %5 : vector<16x128xf32> to vector<16x128xbf16>
    %c1 = arith.constant 1 : index
    %c0_1 = arith.constant 0 : index
    %7 = vector.load %arg1[%c1, %c0_1] : memref<2x128xi32, #tpu.memory_space<vmem>>, vector<1x128xi32>
    %8 = vector.broadcast %7 : vector<1x128xi32> to vector<16x128xi32>
    %9 = arith.cmpi eq, %0, %8 : vector<16x128xi32>
    %10 = arith.extui %9 : vector<16x128xi1> to vector<16x128xi32>
    %11 = arith.sitofp %10 : vector<16x128xi32> to vector<16x128xf32>
    %12 = arith.truncf %11 : vector<16x128xf32> to vector<16x128xbf16>
    %c0_2 = arith.constant 0 : index
    %c0_3 = arith.constant 0 : index
    %13 = vector.load %arg2[%c0_2, %c0_3] : memref<32x16xbf16, #tpu.memory_space<vmem>>, vector<32x16xbf16>
    %cst = arith.constant dense<0.000000e+00> : vector<32x128xf32>
    %14 = tpu.matmul %13, %6, %cst {dimension_numbers = #tpu.dot_dimension_numbers<[1], [0], [0], [1], [0, 0, 1, 1], [], []>} : vector<32x16xbf16>, vector<16x128xbf16>, vector<32x128xf32> -> vector<32x128xf32>
    %15 = arith.truncf %14 : vector<32x128xf32> to vector<32x128xbf16>
    %c0_4 = arith.constant 0 : index
    %c0_5 = arith.constant 0 : index
    %16 = vector.load %arg2[%c0_4, %c0_5] : memref<32x16xbf16, #tpu.memory_space<vmem>>, vector<32x16xbf16>
    %cst_6 = arith.constant dense<0.000000e+00> : vector<32x128xf32>
    %17 = tpu.matmul %16, %12, %cst_6 {dimension_numbers = #tpu.dot_dimension_numbers<[1], [0], [0], [1], [0, 0, 1, 1], [], []>} : vector<32x16xbf16>, vector<16x128xbf16>, vector<32x128xf32> -> vector<32x128xf32>
    %18 = arith.truncf %17 : vector<32x128xf32> to vector<32x128xbf16>
    %c0_7 = arith.constant 0 : index
    %c0_8 = arith.constant 0 : index
    %19 = vector.load %arg3[%c0_7, %c0_8] : memref<64x32xbf16, #tpu.memory_space<vmem>>, vector<64x32xbf16>
    %cst_9 = arith.constant dense<0.000000e+00> : vector<64x128xf32>
    %20 = tpu.matmul %19, %15, %cst_9 {dimension_numbers = #tpu.dot_dimension_numbers<[1], [0], [0], [1], [0, 0, 1, 1], [], []>} : vector<64x32xbf16>, vector<32x128xbf16>, vector<64x128xf32> -> vector<64x128xf32>
    %c0_10 = arith.constant 0 : index
    %c0_11 = arith.constant 0 : index
    %21 = vector.load %arg4[%c0_10, %c0_11] : memref<64x32xbf16, #tpu.memory_space<vmem>>, vector<64x32xbf16>
    %cst_12 = arith.constant dense<0.000000e+00> : vector<64x128xf32>
    %22 = tpu.matmul %21, %18, %cst_12 {dimension_numbers = #tpu.dot_dimension_numbers<[1], [0], [0], [1], [0, 0, 1, 1], [], []>} : vector<64x32xbf16>, vector<32x128xbf16>, vector<64x128xf32> -> vector<64x128xf32>
    %23 = arith.addf %20, %22 : vector<64x128xf32>
    %c0_13 = arith.constant 0 : index
    %c0_14 = arith.constant 0 : index
    %24 = vector.load %arg5[%c0_13, %c0_14] : memref<64x1xf32, #tpu.memory_space<vmem>>, vector<64x1xf32>
    %25 = vector.broadcast %24 : vector<64x1xf32> to vector<64x128xf32>
    %26 = arith.addf %23, %25 : vector<64x128xf32>
    %cst_15 = arith.constant 0.000000e+00 : f32
    %27 = vector.broadcast %cst_15 : f32 to vector<64x128xf32>
    %28 = arith.maximumf %26, %27 : vector<64x128xf32>
    %c0_16 = arith.constant 0 : index
    %c0_17 = arith.constant 0 : index
    %29 = vector.load %arg6[%c0_16, %c0_17] : memref<1x64xf32, #tpu.memory_space<vmem>>, vector<1x64xf32>
    %cst_18 = arith.constant dense<0.000000e+00> : vector<1x128xf32>
    %30 = tpu.matmul %29, %28, %cst_18 {dimension_numbers = #tpu.dot_dimension_numbers<[1], [0], [0], [1], [0, 0, 1, 1], [], []>} : vector<1x64xf32>, vector<64x128xf32>, vector<1x128xf32> -> vector<1x128xf32>
    %c0_19 = arith.constant 0 : index
    %31 = memref.load %arg7[%c0_19] : memref<1xf32, #tpu.memory_space<smem>>
    %32 = vector.broadcast %31 : f32 to vector<1x128xf32>
    %33 = arith.addf %30, %32 : vector<1x128xf32>
    %c0_20 = arith.constant 0 : index
    %c0_21 = arith.constant 0 : index
    %34 = vector.load %arg8[%c0_20, %c0_21] : memref<1x128xf32, #tpu.memory_space<vmem>>, vector<1x128xf32>
    tpu.vector_store %arg8[%c0_20, %c0_21], %33 {strides = array<i32>} : memref<1x128xf32, #tpu.memory_space<vmem>>, vector<1x128xf32>,
    return
  }
  func.func @transform_0(%arg0: i32) -> (i32, i32) {
    %c0_i32 = arith.constant 0 : i32
    %c0_i32_0 = arith.constant 0 : i32
    return %c0_i32, %arg0 : i32, i32
  }
  func.func @transform_1(%arg0: i32) -> (i32, i32) {
    %c0_i32 = arith.constant 0 : i32
    %c0_i32_0 = arith.constant 0 : i32
    %c0_i32_1 = arith.constant 0 : i32
    return %c0_i32, %c0_i32_0 : i32, i32
  }
  func.func @transform_2(%arg0: i32) -> (i32, i32) {
    %c0_i32 = arith.constant 0 : i32
    %c0_i32_0 = arith.constant 0 : i32
    %c0_i32_1 = arith.constant 0 : i32
    return %c0_i32, %c0_i32_0 : i32, i32
  }
  func.func @transform_3(%arg0: i32) -> (i32, i32) {
    %c0_i32 = arith.constant 0 : i32
    %c0_i32_0 = arith.constant 0 : i32
    %c0_i32_1 = arith.constant 0 : i32
    return %c0_i32, %c0_i32_0 : i32, i32
  }
  func.func @transform_4(%arg0: i32) -> (i32, i32) {
    %c0_i32 = arith.constant 0 : i32
    %c0_i32_0 = arith.constant 0 : i32
    %c0_i32_1 = arith.constant 0 : i32
    return %c0_i32, %c0_i32_0 : i32, i32
  }
  func.func @transform_5(%arg0: i32) -> (i32, i32) {
    %c0_i32 = arith.constant 0 : i32
    %c0_i32_0 = arith.constant 0 : i32
    %c0_i32_1 = arith.constant 0 : i32
    return %c0_i32, %c0_i32_0 : i32, i32
  }
  func.func @transform_6(%arg0: i32) -> i32 {
    %c0_i32 = arith.constant 0 : i32
    %c0_i32_0 = arith.constant 0 : i32
    return %c0_i32 : i32
  }
  func.func @transform_7(%arg0: i32) -> (i32, i32) {
    %c0_i32 = arith.constant 0 : i32
    %c0_i32_0 = arith.constant 0 : i32
    return %c0_i32, %arg0 : i32, i32
  }
}

</mosaic_0001>

<bundles_post_ra>
// kernel: view_learner_forward.1
= control target key start
LH: loop header
LB: loop body
LE: loop exit
PB: predicated region body
PF: predicated region fallthrough
CT: control target
= control target key end

     0   :  { %s1327_s0 = inlined_call_operand.vmem [shape: s32[2,300], index: 0, kind: input, shape index: {}]   ;;  %s1328_s1 = inlined_call_operand.vmem [shape: bf16[32,16], index: 1, kind: input, shape index: {}]   ;;  %s1329_s2 = inlined_call_operand.vmem [shape: bf16[64,32], index: 2, kind: input, shape index: {}]   ;;  %s1330_s3 = inlined_call_operand.vmem [shape: bf16[64,32], index: 3, kind: input, shape index: {}]   ;;  %s1331_s4 = inlined_call_operand.vmem [shape: f32[64,1], index: 4, kind: input, shape index: {}]   ;;  %s1332_s5 = inlined_call_operand.vmem [shape: f32[1,64], index: 5, kind: input, shape index: {}]   ;;  %s1333_s6 = inlined_call_operand.<no memory space> [shape: f32[1], index: 6, kind: input, shape index: {}]   ;;  %s1334_s7 = inlined_call_operand.hbm [shape: f32[1,300], index: 7, kind: output, shape index: {}]  }
   0x1   :  { %12 = sst [smem:[#allocation2]] %s1333_s6 }
   0x2   :  { %13 = vsyncpa [#allocation4], 0 }
   0x3   :  { %15 = vsyncpa [#allocation4 + $0x1], 0  ;;  %s1158_s26 = smov 0   ;;  %s1160_s27 = smov 0  }
   0x4   :  { %s1162_s28 = smov 0   ;;  %s1164_s29 = smov 0  }
   0x5 LB: > { %s1179_s6 = sadd.s32 4294967295, %s1107_s29   ;;  %s846_s30 = sadd.s32 4294967294, %s1107_s29   ;;  %s1107_s29 = sphi %s1164_s29, %s1340_s29   ;;  %s1103_s28 = sphi %s1162_s28, %s1339_s28   ;;  %s1099_s27 = sphi %s1160_s27, %s1338_s27   ;;  %s1095_s26 = sphi %s1158_s26, %s1337_s26  }
   0x6   : > { %s1183_s8 = sadd.s32 1, %s1107_s29   ;;  %s180_s9 = sadd.s32 1, %s1103_s28 }
   0x7   : > { %s177_s10 = ssub.s32 %s1107_s29, %s1183_s8  ;;  %p190_p0 = scmp.ne.s32.totalorder %s1103_s28, %s1099_s27 }
   0x8   : > { %p178_p1 = scmp.eq.s32.totalorder %s177_s10, 0  ;;  %p191_p2 = scmp.eq.s32.totalorder %s1179_s6, 2 }
   0x9   : > { %p196_p3 = scmp.ne.s32.totalorder %s1099_s27, %s1095_s26  ;;  %p197_p4 = scmp.eq.s32.totalorder %s846_s30, 2 }
   0xa   : > { %s1194_s11 = scalar_select %p178_p1, %s1103_s28, %s180_s9  }
   0xb   : > { %p1196_p5 = por %p191_p2, %p190_p0  ;;  %p1200_p6 = por %p197_p4, %p196_p3 }
   0xc   : > { %p849_p7 = scmp.ge.s32.totalorder %s1107_s29, 1  ;;  %p240_p8 = scmp.lt.s32.totalorder %s1107_s29, 4 }
   0xe   : > { %p241_p9 = pnand %p849_p7, %p240_p8 }
   0xf   : > { %p270_p10 = scmp.lt.s32.totalorder (!%p241_p9), %s1179_s6, 2  ;;  %v275_v0 = vlaneseq (!%p241_p9)  ;;  %v1035_v1 = vld [vmem:[%s1328_s1] sm:$0xff] (!%p241_p9)   ;;  %vm316_vm0 = vcmask (!%p241_p9), 130048   ;;  %v1109_v6 = vmov (!%p241_p9), 1.0|1.0   ;;  %v1036_v7 = vld [vmem:[%s1328_s1 + $0x8] sm:$0xff] (!%p241_p9)  }
  0x10   : > { %244 = sbr.rel (%p241_p9) target bundleno = 726 (0x2d6), region = 48  ;;  %916 = vmatprep.mubr.msk.bf16.mxu0 (!%p241_p9), %vm316_vm0, %v1035_v1  ;;  %922 = vmatprep.mubr.msk.bf16.mxu1 (!%p241_p9), %vm316_vm0, %v1035_v1  ;;  %v1037_v8 = vld [vmem:[%s1330_s3] sm:$0xff] (!%p241_p9)   ;;  %vm461_vm7 = vcmask (!%p241_p9), 261120   ;;  %v638_v11 = vld [vmem:[%s1331_s4 + $0x10] sm:$0xff] (!%p241_p9)  ;;  %v1110_v12 = vmov (!%p241_p9), 0   ;;  %v637_v13 = vld [vmem:[%s1331_s4 + $0x8] sm:$0xff] (!%p241_p9) }
  0x11   : > { %v276_v2 = vshrl.u32 (!%p241_p9), %v275_v0, 7  ;;  %v1038_v9 = vld [vmem:[%s1329_s2] sm:$0xff] (!%p241_p9)   ;;  %1033 = vset.pattern.permute.xlu0 (!%p241_p9), %v1110_v12  ;;  %1034 = vset.pattern.permute.xlu1 (!%p241_p9), %v1110_v12  ;;  %v639_v14 = vld [vmem:[%s1331_s4 + $0x18] sm:$0xff] (!%p241_p9)  ;;  %v641_v16 = vld [vmem:[%s1331_s4 + $0x28] sm:$0xff] (!%p241_p9)  ;;  %v1111_v37 = vmov (!%p241_p9), 0.0|0.0   ;;  %vm1112_vm8 = vmmov (!%p241_p9), 0  }
  0x12   : > { %v636_v10 = vld [vmem:[%s1331_s4] sm:$0xff] (!%p241_p9)  ;;  %656 = vperm.xlu1 (!%p241_p9), %1034, %v638_v11   ;;  %v642_v17 = vld [vmem:[%s1331_s4 + $0x30] sm:$0xff] (!%p241_p9)  ;;  %v643_v18 = vld [vmem:[%s1331_s4 + $0x38] sm:$0xff] (!%p241_p9)  ;;  %v1113_v38 = vmov (!%p241_p9), 0.0   ;;  %vm703_vm9 = vcmask (!%p241_p9), 523264   ;;  %s701_s9 = sld [smem:[#allocation2]] (!%p241_p9) }
  0x13   : > { %v277_v3 = vadd.s32 (!%p241_p9), 8, %v276_v2  ;;  %646 = vperm.xlu0 (!%p241_p9), %1033, %v636_v10   ;;  %v640_v15 = vld [vmem:[%s1331_s4 + $0x20] sm:$0xff] (!%p241_p9)  ;;  %v1040_v31 = vld [vmem:[%s1329_s2 + $0x8] sm:$0xff] (!%p241_p9)   ;;  %v1042_v33 = vld [vmem:[%s1329_s2 + $0x10] sm:$0xff] (!%p241_p9)   ;;  %s268_s10 = sand.u32 (!%p241_p9), 1, %s1099_s27   ;;  %s884_s14 = sshll.u32 (!%p241_p9), %s1179_s6, 4 }
  0x14   : > { %v1039_v32 = vld [vmem:[%s1330_s3 + $0x8] sm:$0xff] (!%p241_p9)   ;;  %v1041_v34 = vld [vmem:[%s1330_s3 + $0x10] sm:$0xff] (!%p241_p9)   ;;  %v1044_v35 = vld [vmem:[%s1329_s2 + $0x18] sm:$0xff] (!%p241_p9)   ;;  %s269_s15 = scalar_lea.vmem (!%p241_p9), [#allocation3], %s268_s10  ;;  %s1285_s19 = scalar_lea.hbm (!%p241_p9), %s1334_s7, %s884_s14 }
  0x15   : > { %v1043_v36 = vld [vmem:[%s1330_s3 + $0x18] sm:$0xff] (!%p241_p9)  }
  0x16   : > { %661 = vperm.xlu1 (!%p241_p9), %1034, %v639_v14  }
  0x17   : > { %s271_s16 = scalar_select %p270_p10, %s1179_s6, 2  ;;  %651 = vperm.xlu0 %1033, %v637_v13  }
  0x18   : > { %s1114_s6 = smov [#allocation3]  }
  0x19   : > { %s850_s17 = sshll.u32 %s271_s16, 1  ;;  %s791_s16 = sshll.u32 %s269_s15, 4  ;;  %s1287_s16 = int_to_ptr.vmem [resolvable:$true] %s791_s16 }
  0x1a   : > { %s273_s20 = scalar_lea.vmem %s1327_s0, %s850_s17  ;;  %671 = vperm.xlu1 %1034, %v641_v16   ;;  %s1045_s21 = scalar_lea.vmem %s1287_s16, 16 }
  0x1b   : > { %v851_v4 = vld [vmem:[%s273_s20] ss:$0 sm:$0xff]  ;;  %v854_v5 = vld [vmem:[%s273_s20 + $0x1] ss:$0 sm:$0xff]  ;;  %666 = vperm.xlu0 %1033, %v640_v15   ;;  %s779_s20 = scalar_lea.sflag [#allocation4], %s268_s10  ;;  %p1046_p11 = scmp.ne.s32.totalorder %s1287_s16, %s1045_s21 }
  0x1c   : > { %vm283_vm1 = vcmp.eq.s32.totalorder %v276_v2, %v851_v4  ;;  %vm284_vm2 = vcmp.eq.s32.totalorder %v277_v3, %v851_v4  ;;  %vm295_vm3 = vcmp.eq.s32.totalorder %v276_v2, %v854_v5  ;;  %vm296_vm4 = vcmp.eq.s32.totalorder %v277_v3, %v854_v5  ;;  %s1049_s22 = sshll.u32 %s1114_s6, 4  ;;  %s1050_s22 = int_to_ptr.vmem [resolvable:$false] %s1049_s22 }
  0x1d   : > { %vm859_vm5 = vmpackc.low %vm284_vm2, %vm283_vm1  ;;  %p1047_p12 = pnand %p1046_p11, %p1196_p5  ;;  %s1051_s23 = scalar_lea.vmem %s1050_s22, 32 }
  0x1e   : > { %914 = vmatprep.subr.msk.bf16.mxu0 %vm859_vm5, %v1109_v6  ;;  %vm863_vm6 = vmpackc.low %vm296_vm4, %vm295_vm3  ;;  %681 = vperm.xlu1 %1034, %v643_v18   ;;  %p1052_p0 = scmp.lt.s32.totalorder %s1287_s16, %s1050_s22  ;;  %p1053_p1 = scmp.lt.s32.totalorder %s1051_s23, %s1045_s21 }
  0x1f   : > { %920 = vmatprep.subr.msk.bf16.mxu1 %vm863_vm6, %v1109_v6  ;;  %915 = vmatpush3.bf16.msk.msra.mxu0 %vm859_vm5, %v1109_v6  ;;  %p1048_p13 = pneg %p1047_p12 }
  0x20   : > { %921 = vmatpush3.bf16.msk.msra.mxu1 %vm863_vm6, %v1109_v6  ;;  %676 = vperm.xlu0 %1033, %v642_v17   ;;  %p1054_p2 = por %p1053_p1, %p1052_p0 }
  0x22   : > { %917 = vmatmul.mubr.msk.bf16.vlgmr.msra.gmra.mrb[0].mxu0 %vm316_vm0, %v1036_v7  ;;  %p1055_p3 = pnand %p1054_p2, %p1048_p13 }
  0x23   : > { %923 = vmatmul.mubr.msk.bf16.vlgmr.msra.gmra.mrb[0].mxu1 %vm316_vm0, %v1036_v7  ;;  %942 = vmatprep.mubr.msk.bf16.mxu0 %vm461_vm7, %v1038_v9 }
  0x24   : > { %930 = vmatprep.mubr.msk.bf16.mxu1 %vm461_vm7, %v1037_v8 }
  0x91   : > { %v657_v40 = vpop.permute.xlu1 %656 }
  0x92   : > { %v647_v39 = vpop.permute.xlu0 %646 }
  0x95   : > { %v662_v42 = vpop.permute.xlu1 %661 }
  0x96   : > { %v652_v41 = vpop.permute.xlu0 %651 }
  0x99   : > { %v672_v59 = vpop.permute.xlu1 %671 }
  0x9a   : > { %v667_v43 = vpop.permute.xlu0 %666 }
  0x9d   : > { %v682_v16 = vpop.permute.xlu1 %681 }
  0x9f   : > { %v677_v62 = vpop.permute.xlu0 %676 }
  0xf5   : > { %v918_v19 = vpop.f32.mrb[0].mxu0 }
  0xf6   : > { %v924_v20 = vpop.f32.mrb[0].mxu1  ;;  %v357_v21 = vpop.f32.mrb[1].mxu0 }
  0xf7   : > { %v408_v22 = vpop.f32.mrb[1].mxu1  ;;  %v919_v23 = vpop.f32.mrb[2].mxu0 }
  0xf8   : > { %v373_v24 = vpack.c.bf16 %v919_v23, %v918_v19  ;;  %v925_v25 = vpop.f32.mrb[2].mxu1  ;;  %v360_v26 = vpop.f32.mrb[3].mxu0 }
  0xf9   : > { %v424_v27 = vpack.c.bf16 %v925_v25, %v924_v20  ;;  %v372_v28 = vpack.c.bf16 %v360_v26, %v357_v21  ;;  %v411_v29 = vpop.f32.mrb[3].mxu1 }
  0xfa   : > { %v423_v30 = vpack.c.bf16 %v411_v29, %v408_v22 }
  0xfb   : > { %938 = vmatprep.subr.bf16.mxu0 %v372_v28 }
  0xfc   : > { %926 = vmatprep.subr.bf16.mxu1 %v423_v30  ;;  %939 = vmatpush3.bf16.msra.mxu0 %v372_v28  ;;  %v702_v28 = vstv %s701_s9 }
  0xfd   : > { %927 = vmatpush3.bf16.msra.mxu1 %v423_v30  ;;  %940 = vmatprep.subr.bf16.mxu0 %v373_v24 }
  0xfe   : > { %928 = vmatprep.subr.bf16.mxu1 %v424_v27 }
 0x100   : > { %941 = vmatpush3.bf16.msra.mxu0 %v373_v24 }
 0x101   : > { %929 = vmatpush3.bf16.msra.mxu1 %v424_v27  ;;  %v700_v27 = vld [vmem:[%s1332_s5] sm:$0x1] }
 0x102   : > { %969 = vmatprep.subr.bf16.mxu1 %v1111_v37 }
 0x103   : > { %943 = vmatmul.mubr.msk.bf16.vlgmr.msra.gmra.mrb[4].mxu0 %vm461_vm7, %v1040_v31 }
 0x104   : > { %931 = vmatmul.mubr.msk.bf16.vlgmr.msra.gmra.mrb[4].mxu1 %vm461_vm7, %v1039_v32  ;;  %946 = vmatprep.mubr.msk.bf16.mxu0 %vm461_vm7, %v1042_v33 }
 0x105   : > { %934 = vmatprep.mubr.msk.bf16.mxu1 %vm461_vm7, %v1041_v34 }
 0x10b   : > { %947 = vmatmul.mubr.msk.bf16.gmra.mrb[8].mxu0 %vm461_vm7, %v1044_v35 }
 0x10c   : > { %935 = vmatmul.mubr.msk.bf16.gmra.mrb[8].mxu1 %vm461_vm7, %v1043_v36 }
 0x10d   : > { %966 = vmatprep.mubr.msk.f32.mxu1 %vm1112_vm8, %v1113_v38 }
 0x1d6   : > { %v944_v44 = vpop.f32.mrb[4].mxu0 }
 0x1d7   : > { %v932_v45 = vpop.f32.mrb[4].mxu1  ;;  %v605_v46 = vpop.f32.mrb[5].mxu0 }
 0x1d8   : > { %v614_v47 = vadd.f32 %v944_v44, %v932_v45  ;;  %v508_v48 = vpop.f32.mrb[5].mxu1  ;;  %v945_v49 = vpop.f32.mrb[6].mxu0 }
 0x1d9   : > { %v606_v50 = vadd.f32 %v605_v46, %v508_v48  ;;  %v933_v51 = vpop.f32.mrb[6].mxu1  ;;  %v608_v52 = vpop.f32.mrb[7].mxu0 }
 0x1da   : > { %v686_v53 = vadd.f32 %v657_v40, %v614_v47  ;;  %v617_v54 = vadd.f32 %v945_v49, %v933_v51  ;;  %v511_v55 = vpop.f32.mrb[7].mxu1 }
 0x1db   : > { %v684_v56 = vadd.f32 %v647_v39, %v606_v50  ;;  %v609_v57 = vadd.f32 %v608_v52, %v511_v55 }
 0x1dc   : > { %v687_v58 = vadd.f32 %v662_v42, %v617_v54  ;;  %v694_v61 = vmax.f32 %v686_v53, 0.0 }
 0x1dd   : > { %v685_v60 = vadd.f32 %v652_v41, %v609_v57  ;;  %v692_v1 = vmax.f32 %v684_v56, 0.0 }
 0x1de   : > { %v695_v63 = vmax.f32 %v687_v58, 0.0  ;;  %v948_v0 = vpop.f32.mrb[8].mxu0 }
 0x1df   : > { %v693_v2 = vmax.f32 %v685_v60, 0.0  ;;  %v936_v3 = vpop.f32.mrb[8].mxu1  ;;  %v621_v4 = vpop.f32.mrb[9].mxu0 }
 0x1e0   : > { %v973_v5 = vpack.c.bf16 %v695_v63, %v694_v61  ;;  %v630_v6 = vadd.f32 %v948_v0, %v936_v3  ;;  %v524_v7 = vpop.f32.mrb[9].mxu1  ;;  %v949_v8 = vpop.f32.mrb[10].mxu0 }
 0x1e1   : > { %v970_v9 = vpack.c.bf16 %v693_v2, %v692_v1  ;;  %v622_v10 = vadd.f32 %v621_v4, %v524_v7  ;;  %v937_v11 = vpop.f32.mrb[10].mxu1  ;;  %v624_v12 = vpop.f32.mrb[11].mxu0 }
 0x1e2   : > { %v690_v13 = vadd.f32 %v677_v62, %v630_v6  ;;  %v633_v14 = vadd.f32 %v949_v8, %v937_v11  ;;  %v527_v15 = vpop.f32.mrb[11].mxu1 }
 0x1e3   : > { %v688_v17 = vadd.f32 %v667_v43, %v622_v10  ;;  %v625_v18 = vadd.f32 %v624_v12, %v527_v15  ;;  %971 = vmatpush3.bf16.msra.mxu1 %v970_v9 }
 0x1e4   : > { %v691_v19 = vadd.f32 %v682_v16, %v633_v14  ;;  %972 = vmatprep.subr.bf16.mxu1 %v1111_v37  ;;  %v698_v21 = vmax.f32 %v690_v13, 0.0 }
 0x1e5   : > { %v689_v20 = vadd.f32 %v672_v59, %v625_v18  ;;  %v696_v23 = vmax.f32 %v688_v17, 0.0 }
 0x1e6   : > { %v699_v22 = vmax.f32 %v691_v19, 0.0 }
 0x1e7   : > { %v697_v24 = vmax.f32 %v689_v20, 0.0  ;;  %974 = vmatpush3.bf16.msra.mxu1 %v973_v5 }
 0x1e8   : > { %v979_v25 = vpack.c.bf16 %v699_v22, %v698_v21  ;;  %975 = vmatprep.subr.bf16.mxu1 %v1111_v37 }
 0x1e9   : > { %v976_v26 = vpack.c.bf16 %v697_v24, %v696_v23 }
 0x1eb   : > { %977 = vmatpush3.bf16.msra.mxu1 %v976_v26 }
 0x1ec   : > { %978 = vmatprep.subr.bf16.mxu1 %v1111_v37 }
 0x1ef   : > { %980 = vmatpush3.bf16.msra.mxu1 %v979_v25 }
 0x1f2   : > { %967 = vmatmul.mubr.msk.f32.vlgmr.msra.gmra.mrb[12].mxu1 %vm703_vm9, %v700_v27 }
 0x2c5   : > { %v773_v29 = vpop.f32.mrb[12].mxu1 }
 0x2c6   : > { %v774_v30 = vadd.f32 %v773_v29, %v702_v28  ;;  %v968_v31 = vpop.f32.mrb[13].mxu1 }
 0x2c8   : > { %777 = vst [vmem:[%s269_s15] sm:$0x1] %v774_v30 }
 0x2c9   : > { %1058 = shalt.err (!%p1055_p3)
}
 0x2ca   : > { %s1059_s24 = scalar_lea.hbm %s1285_s19, 16  ;;  %s1063_s9 = scalar_lea.hbm %s1334_s7, 48 }
 0x2cb   : > { %p1060_p4 = scmp.ne.s32.totalorder %s1285_s19, %s1059_s24  ;;  %p1064_p9 = scmp.lt.u32.totalorder %s1285_s19, %s1334_s7 }
 0x2cc   : > { %p1065_p10 = scmp.lt.u32.totalorder %s1063_s9, %s1059_s24  ;;  %p1067_p12 = scmp.lt.u32.totalorder %s1059_s24, %s1285_s19 }
 0x2cd   : > { %p1061_p7 = pnand %p1060_p4, %p1196_p5 }
 0x2ce   : > { %p1066_p11 = por %p1065_p10, %p1064_p9 }
 0x2cf   : > { %p1062_p8 = pneg %p1061_p7 }
 0x2d0   : > { %p1068_p13 = por %p1067_p12, %p1066_p11 }
 0x2d2   : > { %p1069_p0 = pnand %p1068_p13, %p1062_p8 }
 0x2d4   : > { %1072 = shalt.err (!%p1069_p0)
}
 0x2d5   : > { %989 = dma.vmem_to_hbm [thread:$0]  (%p1196_p5), %s1287_s16, 16, %s1285_s19, %s779_s20  }
 0x2d6 PF: > { %p995_p1 = scmp.ge.s32.totalorder %s1107_s29, 2  ;;  %s803_s15 = sand.u32 1, %s1095_s26  }
 0x2d7   : > { %s804_s17 = scalar_lea.sflag [#allocation4], %s803_s15 }
 0x2d8   : > { %p992_p2 = pnand %p995_p1, %p1200_p6 }
 0x2da   : > { %1090 = dma.done.wait (!%p992_p2), %s804_s17, 16  }
 0x2db   : > { %1092 = vsyncadd (!%p992_p2), %s804_s17, 4294967280  ;;  %p18_p3 = scmp.ge.s32.totalorder %s1183_s8, 5   ;;  %s1337_s26 = smov %s1099_s27 }
 0x2dc   : > { %s1338_s27 = smov %s1103_s28  ;;  %s1339_s28 = smov %s1194_s11 }
 0x2dd   : > { %s1340_s29 = smov %s1183_s8  ;;  %20 = sbr.rel (!%p18_p3) target bundleno = 5 (0x5), region = 83 }
 0x2e4   :  { %808 = vsyncpa [#allocation4], 1 }
 0x2e5   :  { %810 = vsyncpa [#allocation4 + $0x1], 1 }

</bundles_post_ra>
